<compile_context>
chip_gen: v7x
topology: tpu7x:2x2x1
jax: 0.10.0
libtpu: 0.0.40
codegen_flags: <defaults>
</compile_context>

<pallas_src>
import jax
import jax.numpy as jnp
from jax.experimental import pallas as pl
from jax.experimental.pallas import tpu as pltpu


def _encoder_gru_seq_kernel(tok_ref,            # SMEM (T,) int32  (scalar prefetch)
                            emb_hbm,            # HBM  (V, H)      (pl.ANY, row-gathered)
                            wi_ref, wh_ref,     # VMEM (H, 3H)     packed [r|z|n], resident
                            bi_ref, bh_ref,     # VMEM (1, 3H)
                            h0_ref,             # VMEM (1, H)      initial hidden state
                            out_ref,            # VMEM (T, H)      per-step hidden states
                            x_buf,              # VMEM (1, H)      gathered embedding row
                            x_sem,              # DMA completion semaphore
                            h_state):           # VMEM (1, H)      carried hidden state
    t = pl.program_id(0)
    H = h0_ref.shape[1]
    V = emb_hbm.shape[0]

    @pl.when(t == 0)
    def _():
        h_state[...] = h0_ref[...]

    # Gather exactly one embedding row from the HBM-resident table (H*4 bytes
    # per step instead of the whole V*H*4-byte table per call).
    tok = jnp.clip(tok_ref[t], 0, V - 1)
    cp = pltpu.make_async_copy(emb_hbm.at[pl.ds(tok, 1), :], x_buf, x_sem)
    cp.start()
    cp.wait()

    x = x_buf[...]                                  # (1, H)
    h = h_state[...]                                # (1, H)

    # Two fused MXU matmuls: (1,H) @ (H,3H) -> (1,3H). gi and gh stay separate
    # because of the r * gh_n term (2 matmuls is the floor for a GRU step).
    gi = jnp.dot(x, wi_ref[...], preferred_element_type=jnp.float32) + bi_ref[...]
    gh = jnp.dot(h, wh_ref[...], preferred_element_type=jnp.float32) + bh_ref[...]

    # PyTorch nn.GRU gate order (r, z, n); b_hn lives inside the r * gh_n term.
    r = jax.nn.sigmoid(gi[:, 0:H] + gh[:, 0:H])
    z = jax.nn.sigmoid(gi[:, H:2 * H] + gh[:, H:2 * H])
    n = jnp.tanh(gi[:, 2 * H:3 * H] + r * gh[:, 2 * H:3 * H])
    h_new = (1.0 - z) * n + z * h

    h_state[...] = h_new
    out_ref[pl.ds(t, 1), :] = h_new                 # row t of the resident output slab


def pack_params(params):
    """One-time packing of PyTorch-layout GRU params into the kernel layout."""
    H = params["embedding"].shape[1]
    return {
        "embedding": params["embedding"].astype(jnp.float32),          # (V, H)
        "W_i": params["weight_ih"].T.astype(jnp.float32),              # (H, 3H) [r|z|n]
        "W_h": params["weight_hh"].T.astype(jnp.float32),              # (H, 3H) [r|z|n]
        "b_i": params["bias_ih"].reshape(1, 3 * H).astype(jnp.float32),
        "b_h": params["bias_hh"].reshape(1, 3 * H).astype(jnp.float32),
    }


def encoder_gru_sequence(tokens, hidden, packed):
    """Run the encoder over a whole token sequence in ONE pallas_call.

    tokens: (T,) int32; hidden: (1, 1, H) f32 initial state.
    Returns a (T, H) array of per-step hidden states (row T-1 is the final hidden).
    """
    emb = packed["embedding"]
    V, H = emb.shape
    T = int(tokens.shape[0])
    tokens = jnp.asarray(tokens, jnp.int32).reshape(T)
    h0 = hidden.reshape(1, H).astype(jnp.float32)

    grid_spec = pltpu.PrefetchScalarGridSpec(
        num_scalar_prefetch=1,                               # token ids -> SMEM
        grid=(T,),
        in_specs=[
            pl.BlockSpec(memory_space=pl.ANY),               # embedding table stays in HBM
            pl.BlockSpec((H, 3 * H), lambda t, tok: (0, 0)),  # W_i, VMEM-resident
            pl.BlockSpec((H, 3 * H), lambda t, tok: (0, 0)),  # W_h, VMEM-resident
            pl.BlockSpec((1, 3 * H), lambda t, tok: (0, 0)),  # b_i
            pl.BlockSpec((1, 3 * H), lambda t, tok: (0, 0)),  # b_h
            pl.BlockSpec((1, H), lambda t, tok: (0, 0)),      # h0
        ],
        out_specs=pl.BlockSpec((T, H), lambda t, tok: (0, 0)),  # resident across time
        scratch_shapes=[
            pltpu.VMEM((1, H), jnp.float32),       # gathered embedding row
            pltpu.SemaphoreType.DMA(()),           # its DMA completion semaphore
            pltpu.VMEM((1, H), jnp.float32),       # carried hidden state
        ],
    )

    return pl.pallas_call(
        _encoder_gru_seq_kernel,
        out_shape=jax.ShapeDtypeStruct((T, H), jnp.float32),
        grid_spec=grid_spec,
        compiler_params=pltpu.CompilerParams(
            dimension_semantics=("arbitrary",),    # time axis carries state: sequential
        ),
    )(tokens, emb, packed["W_i"], packed["W_h"], packed["b_i"], packed["b_h"], h0)


def encoder_rnn_forward(tok, hidden, packed):
    """Module-equivalent forward (seq_len=1, batch=1): returns (output, hidden),
    both (1, 1, H), exactly like EncoderRNN.forward."""
    H = hidden.shape[-1]
    tok_arr = jnp.asarray(tok, jnp.int32).reshape(1)
    outs = encoder_gru_sequence(tok_arr, hidden, packed)   # (1, H)
    h_new = outs.reshape(1, 1, H)
    return h_new, h_new                                    # output == hidden for seq=1


def _ref_gru_sequence(tokens, hidden, params):
    """Pure-JAX reference reproducing nn.Embedding + nn.GRU over a sequence."""
    H = hidden.shape[-1]
    h = hidden.reshape(1, H).astype(jnp.float32)
    outs = []
    for t in range(tokens.shape[0]):
        x = params["embedding"][tokens[t]].reshape(1, H)
        gi = x @ params["weight_ih"].T + params["bias_ih"]
        gh = h @ params["weight_hh"].T + params["bias_hh"]
        i_r, i_z, i_n = gi[:, :H], gi[:, H:2 * H], gi[:, 2 * H:]
        h_r, h_z, h_n = gh[:, :H], gh[:, H:2 * H], gh[:, 2 * H:]
        r = jax.nn.sigmoid(i_r + h_r)
        z = jax.nn.sigmoid(i_z + h_z)
        n = jnp.tanh(i_n + r * h_n)
        h = (1.0 - z) * n + z * h
        outs.append(h)
    return jnp.concatenate(outs, axis=0), h


if __name__ == "__main__":
    VOCAB = 64    # input_size (vocab)
    HIDDEN = 32   # hidden_size
    SEQ = 8       # encoder sequence length for the fused-time-loop path

    key = jax.random.PRNGKey(0)
    k_emb, k_wih, k_whh, k_bih, k_bhh, k_tok = jax.random.split(key, 6)
    bound = 1.0 / jnp.sqrt(HIDDEN)
    params = {
        # nn.Embedding default init: N(0, 1)
        "embedding": jax.random.normal(k_emb, (VOCAB, HIDDEN), jnp.float32),
        # nn.GRU default init: U(-1/sqrt(H), 1/sqrt(H)), gate order (r, z, n)
        "weight_ih": jax.random.uniform(k_wih, (3 * HIDDEN, HIDDEN), jnp.float32,
                                        -bound, bound),
        "weight_hh": jax.random.uniform(k_whh, (3 * HIDDEN, HIDDEN), jnp.float32,
                                        -bound, bound),
        "bias_ih": jax.random.uniform(k_bih, (3 * HIDDEN,), jnp.float32, -bound, bound),
        "bias_hh": jax.random.uniform(k_bhh, (3 * HIDDEN,), jnp.float32, -bound, bound),
    }
    packed = pack_params(params)   # gate fusion / transposition done ONCE, off the hot path

    tokens = jax.random.randint(k_tok, (SEQ,), 0, VOCAB, dtype=jnp.int32)
    hidden0 = jnp.zeros((1, 1, HIDDEN), jnp.float32)   # EncoderRNN.initHidden()

    # --- sequence path: whole encoder unroll inside one pallas_call ---------
    outs = jax.block_until_ready(encoder_gru_sequence(tokens, hidden0, packed))
    ref_outs, ref_h = _ref_gru_sequence(tokens, hidden0, params)
    assert outs.shape == (SEQ, HIDDEN)
    assert jnp.allclose(outs, ref_outs, atol=1e-5, rtol=1e-5)
    assert jnp.allclose(outs[-1:], ref_h, atol=1e-5, rtol=1e-5)

    # --- module-equivalent single-step forward (seq=1, batch=1) -------------
    out1, hid1 = encoder_rnn_forward(tokens[:1], hidden0, packed)
    out1 = jax.block_until_ready(out1)
    hid1 = jax.block_until_ready(hid1)
    assert out1.shape == (1, 1, HIDDEN) and hid1.shape == (1, 1, HIDDEN)
    assert jnp.allclose(out1.reshape(1, HIDDEN), ref_outs[:1], atol=1e-5, rtol=1e-5)
    assert jnp.allclose(hid1, out1)

    print("KERNEL_OK")
</pallas_src>

<mosaic_0001>
module attributes {stable_mosaic.version = 11 : i64} {
  func.func @_encoder_gru_seq_kernel(%arg0: i32, %arg1: memref<8xi32, #tpu.memory_space<smem>>, %arg2: memref<64x32xf32, #tpu.memory_space<any>>, %arg3: memref<32x96xf32, #tpu.memory_space<vmem>>, %arg4: memref<32x96xf32, #tpu.memory_space<vmem>>, %arg5: memref<1x96xf32, #tpu.memory_space<vmem>>, %arg6: memref<1x96xf32, #tpu.memory_space<vmem>>, %arg7: memref<1x32xf32, #tpu.memory_space<vmem>>, %arg8: memref<8x32xf32, #tpu.memory_space<vmem>>, %arg9: memref<1x32xf32, #tpu.memory_space<vmem>>, %arg10: memref<!tpu.dma_semaphore, #tpu.memory_space<semaphore_mem>>, %arg11: memref<1x32xf32, #tpu.memory_space<vmem>>) attributes {dimension_semantics = [#tpu.dimension_semantics<arbitrary>], iteration_bounds = array<i64: 8>, scalar_prefetch = 1 : i64, scratch_operands = 3 : i64, tpu.core_type = #tpu.core_type<tc>, window_params = [{}, {pipeline_mode = #tpu.pipeline_mode<synchronous>, transform_indices = @transform_1, window_bounds = array<i64: 32, 96>}, {pipeline_mode = #tpu.pipeline_mode<synchronous>, transform_indices = @transform_2, window_bounds = array<i64: 32, 96>}, {pipeline_mode = #tpu.pipeline_mode<synchronous>, transform_indices = @transform_3, window_bounds = array<i64: 1, 96>}, {pipeline_mode = #tpu.pipeline_mode<synchronous>, transform_indices = @transform_4, window_bounds = array<i64: 1, 96>}, {pipeline_mode = #tpu.pipeline_mode<synchronous>, transform_indices = @transform_5, window_bounds = array<i64: 1, 32>}, {pipeline_mode = #tpu.pipeline_mode<synchronous>, transform_indices = @transform_6, window_bounds = array<i64: 8, 32>}]} {
    %c0_i32 = arith.constant 0 : i32
    %0 = arith.cmpi eq, %arg0, %c0_i32 : i32
    %1 = arith.extui %0 : i1 to i32
    %c0_i32_0 = arith.constant 0 : i32
    %2 = arith.cmpi ne, %1, %c0_i32_0 : i32
    scf.if %2 {
      %c0_22 = arith.constant 0 : index
      %c0_23 = arith.constant 0 : index
      %48 = vector.load %arg7[%c0_22, %c0_23] : memref<1x32xf32, #tpu.memory_space<vmem>>, vector<1x32xf32>
      %c0_24 = arith.constant 0 : index
      %c0_25 = arith.constant 0 : index
      %49 = vector.load %arg11[%c0_24, %c0_25] : memref<1x32xf32, #tpu.memory_space<vmem>>, vector<1x32xf32>
      tpu.vector_store %arg11[%c0_24, %c0_25], %48 {strides = array<i32>} : memref<1x32xf32, #tpu.memory_space<vmem>>, vector<1x32xf32>,
    } else {
    }
    %3 = arith.index_cast %arg0 : i32 to index
    %4 = memref.load %arg1[%3] : memref<8xi32, #tpu.memory_space<smem>>
    %c0_i32_1 = arith.constant 0 : i32
    %c63_i32 = arith.constant 63 : i32
    %5 = arith.maxsi %c0_i32_1, %4 : i32
    %6 = arith.minsi %c63_i32, %5 : i32
    %c0_i32_2 = arith.constant 0 : i32
    %7 = tpu.memref_slice %arg2[%6, %c0_i32_2] : memref<64x32xf32, #tpu.memory_space<any>> -> memref<1x32xf32, #tpu.memory_space<any>>
    tpu.enqueue_dma source(%7 : memref<1x32xf32, #tpu.memory_space<any>>) target(%arg9 : memref<1x32xf32, #tpu.memory_space<vmem>>) target_semaphore(%arg10 : memref<!tpu.dma_semaphore, #tpu.memory_space<semaphore_mem>>)
    %c0_i32_3 = arith.constant 0 : i32
    %8 = tpu.memref_slice %arg2[%6, %c0_i32_3] : memref<64x32xf32, #tpu.memory_space<any>> -> memref<1x32xf32, #tpu.memory_space<any>>
    tpu.wait_dma2 semaphore(%arg10 : memref<!tpu.dma_semaphore, #tpu.memory_space<semaphore_mem>>) src(%8 : memref<1x32xf32, #tpu.memory_space<any>>) dst(%arg9 : memref<1x32xf32, #tpu.memory_space<vmem>>)
    %c0 = arith.constant 0 : index
    %c0_4 = arith.constant 0 : index
    %9 = vector.load %arg9[%c0, %c0_4] : memref<1x32xf32, #tpu.memory_space<vmem>>, vector<1x32xf32>
    %c0_5 = arith.constant 0 : index
    %c0_6 = arith.constant 0 : index
    %10 = vector.load %arg11[%c0_5, %c0_6] : memref<1x32xf32, #tpu.memory_space<vmem>>, vector<1x32xf32>
    %c0_7 = arith.constant 0 : index
    %c0_8 = arith.constant 0 : index
    %11 = vector.load %arg3[%c0_7, %c0_8] : memref<32x96xf32, #tpu.memory_space<vmem>>, vector<32x96xf32>
    %cst = arith.constant dense<0.000000e+00> : vector<1x96xf32>
    %12 = tpu.matmul %9, %11, %cst {dimension_numbers = #tpu.dot_dimension_numbers<[1], [0], [0], [1], [0, 0, 1, 1], [], []>} : vector<1x32xf32>, vector<32x96xf32>, vector<1x96xf32> -> vector<1x96xf32>
    %c0_9 = arith.constant 0 : index
    %c0_10 = arith.constant 0 : index
    %13 = vector.load %arg5[%c0_9, %c0_10] : memref<1x96xf32, #tpu.memory_space<vmem>>, vector<1x96xf32>
    %14 = arith.addf %12, %13 : vector<1x96xf32>
    %c0_11 = arith.constant 0 : index
    %c0_12 = arith.constant 0 : index
    %15 = vector.load %arg4[%c0_11, %c0_12] : memref<32x96xf32, #tpu.memory_space<vmem>>, vector<32x96xf32>
    %cst_13 = arith.constant dense<0.000000e+00> : vector<1x96xf32>
    %16 = tpu.matmul %10, %15, %cst_13 {dimension_numbers = #tpu.dot_dimension_numbers<[1], [0], [0], [1], [0, 0, 1, 1], [], []>} : vector<1x32xf32>, vector<32x96xf32>, vector<1x96xf32> -> vector<1x96xf32>
    %c0_14 = arith.constant 0 : index
    %c0_15 = arith.constant 0 : index
    %17 = vector.load %arg6[%c0_14, %c0_15] : memref<1x96xf32, #tpu.memory_space<vmem>>, vector<1x96xf32>
    %18 = arith.addf %16, %17 : vector<1x96xf32>
    %19 = vector.extract_strided_slice %14 {offsets = [0, 0], sizes = [1, 32], strides = [1, 1]} : vector<1x96xf32> to vector<1x32xf32>
    %20 = vector.extract_strided_slice %18 {offsets = [0, 0], sizes = [1, 32], strides = [1, 1]} : vector<1x96xf32> to vector<1x32xf32>
    %21 = arith.addf %19, %20 : vector<1x32xf32>
    %22 = arith.negf %21 : vector<1x32xf32>
    %23 = math.exp %22 : vector<1x32xf32>
    %cst_16 = arith.constant 1.000000e+00 : f32
    %24 = vector.broadcast %cst_16 : f32 to vector<1x32xf32>
    %25 = arith.addf %24, %23 : vector<1x32xf32>
    %26 = arith.divf %24, %25 : vector<1x32xf32>
    %27 = vector.extract_strided_slice %14 {offsets = [0, 32], sizes = [1, 32], strides = [1, 1]} : vector<1x96xf32> to vector<1x32xf32>
    %28 = vector.extract_strided_slice %18 {offsets = [0, 32], sizes = [1, 32], strides = [1, 1]} : vector<1x96xf32> to vector<1x32xf32>
    %29 = arith.addf %27, %28 : vector<1x32xf32>
    %30 = arith.negf %29 : vector<1x32xf32>
    %31 = math.exp %30 : vector<1x32xf32>
    %cst_17 = arith.constant 1.000000e+00 : f32
    %32 = vector.broadcast %cst_17 : f32 to vector<1x32xf32>
    %33 = arith.addf %32, %31 : vector<1x32xf32>
    %34 = arith.divf %32, %33 : vector<1x32xf32>
    %35 = vector.extract_strided_slice %14 {offsets = [0, 64], sizes = [1, 32], strides = [1, 1]} : vector<1x96xf32> to vector<1x32xf32>
    %36 = vector.extract_strided_slice %18 {offsets = [0, 64], sizes = [1, 32], strides = [1, 1]} : vector<1x96xf32> to vector<1x32xf32>
    %37 = arith.mulf %26, %36 : vector<1x32xf32>
    %38 = arith.addf %35, %37 : vector<1x32xf32>
    %39 = math.tanh %38 : vector<1x32xf32>
    %cst_18 = arith.constant 1.000000e+00 : f32
    %40 = vector.broadcast %cst_18 : f32 to vector<1x32xf32>
    %41 = arith.subf %40, %34 : vector<1x32xf32>
    %42 = arith.mulf %41, %39 : vector<1x32xf32>
    %43 = arith.mulf %34, %10 : vector<1x32xf32>
    %44 = arith.addf %42, %43 : vector<1x32xf32>
    %c0_19 = arith.constant 0 : index
    %c0_20 = arith.constant 0 : index
    %45 = vector.load %arg11[%c0_19, %c0_20] : memref<1x32xf32, #tpu.memory_space<vmem>>, vector<1x32xf32>
    tpu.vector_store %arg11[%c0_19, %c0_20], %44 {strides = array<i32>} : memref<1x32xf32, #tpu.memory_space<vmem>>, vector<1x32xf32>,
    %46 = arith.index_cast %arg0 : i32 to index
    %c0_21 = arith.constant 0 : index
    %47 = vector.load %arg8[%46, %c0_21] : memref<8x32xf32, #tpu.memory_space<vmem>>, vector<1x32xf32>
    tpu.vector_store %arg8[%46, %c0_21], %44 {strides = array<i32>} : memref<8x32xf32, #tpu.memory_space<vmem>>, vector<1x32xf32>,
    return
  }
  func.func @transform_1(%arg0: i32, %arg1: memref<8xi32, #tpu.memory_space<smem>>) -> (i32, i32) {
    %c0_i32 = arith.constant 0 : i32
    %c0_i32_0 = arith.constant 0 : i32
    %c0_i32_1 = arith.constant 0 : i32
    return %c0_i32, %c0_i32_0 : i32, i32
  }
  func.func @transform_2(%arg0: i32, %arg1: memref<8xi32, #tpu.memory_space<smem>>) -> (i32, i32) {
    %c0_i32 = arith.constant 0 : i32
    %c0_i32_0 = arith.constant 0 : i32
    %c0_i32_1 = arith.constant 0 : i32
    return %c0_i32, %c0_i32_0 : i32, i32
  }
  func.func @transform_3(%arg0: i32, %arg1: memref<8xi32, #tpu.memory_space<smem>>) -> (i32, i32) {
    %c0_i32 = arith.constant 0 : i32
    %c0_i32_0 = arith.constant 0 : i32
    %c0_i32_1 = arith.constant 0 : i32
    return %c0_i32, %c0_i32_0 : i32, i32
  }
  func.func @transform_4(%arg0: i32, %arg1: memref<8xi32, #tpu.memory_space<smem>>) -> (i32, i32) {
    %c0_i32 = arith.constant 0 : i32
    %c0_i32_0 = arith.constant 0 : i32
    %c0_i32_1 = arith.constant 0 : i32
    return %c0_i32, %c0_i32_0 : i32, i32
  }
  func.func @transform_5(%arg0: i32, %arg1: memref<8xi32, #tpu.memory_space<smem>>) -> (i32, i32) {
    %c0_i32 = arith.constant 0 : i32
    %c0_i32_0 = arith.constant 0 : i32
    %c0_i32_1 = arith.constant 0 : i32
    return %c0_i32, %c0_i32_0 : i32, i32
  }
  func.func @transform_6(%arg0: i32, %arg1: memref<8xi32, #tpu.memory_space<smem>>) -> (i32, i32) {
    %c0_i32 = arith.constant 0 : i32
    %c0_i32_0 = arith.constant 0 : i32
    %c0_i32_1 = arith.constant 0 : i32
    return %c0_i32, %c0_i32_0 : i32, i32
  }
}

</mosaic_0001>

<bundles_post_ra>
// kernel: tpu_custom_call.1
= control target key start
LH: loop header
LB: loop body
LE: loop exit
PB: predicated region body
PF: predicated region fallthrough
CT: control target
= control target key end

     0   :  { %s786_s0 = inlined_call_operand.vmem [shape: s32[8], index: 0, kind: input, shape index: {}]   ;;  %s787_s1 = inlined_call_operand.vmem [shape: f32[64,32], index: 1, kind: input, shape index: {}]   ;;  %s788_s2 = inlined_call_operand.vmem [shape: f32[32,96], index: 2, kind: input, shape index: {}]   ;;  %s789_s3 = inlined_call_operand.vmem [shape: f32[32,96], index: 3, kind: input, shape index: {}]   ;;  %s790_s4 = inlined_call_operand.vmem [shape: f32[1,96], index: 4, kind: input, shape index: {}]   ;;  %s791_s5 = inlined_call_operand.vmem [shape: f32[1,96], index: 5, kind: input, shape index: {}]   ;;  %s792_s6 = inlined_call_operand.vmem [shape: f32[1,32], index: 6, kind: input, shape index: {}]   ;;  %s793_s7 = inlined_call_operand.hbm [shape: f32[8,32], index: 7, kind: output, shape index: {}]  }
   0x1   :  { %s12_s26 = sshll.u32 %s786_s0, 4  ;;  %s13_s26 = int_to_ptr.vmem [resolvable:$true] %s12_s26 }
   0x2   :  { %s606_s27 = scalar_lea.vmem %s13_s26, 16  ;;  %p611_p1 = scmp.lt.s32.totalorder %s13_s26, %s13_s26 }
   0x3   :  { %p607_p0 = scmp.ne.s32.totalorder %s13_s26, %s606_s27  ;;  %p612_p2 = scmp.lt.s32.totalorder %s606_s27, %s606_s27 }
   0x5   :  { %p613_p3 = por %p612_p2, %p611_p1 }
   0x7   :  { %p614_p4 = pnand %p613_p3, %p607_p0 }
   0x9   :  { %617 = shalt.err (!%p614_p4)  }
   0xa   :  { %s660_s28 = smov [#allocation6]  }
   0xb   :  { %15 = dma.vmem_to_smem %s13_s26, 16, %s660_s28, [#allocation5] }
   0xc   :  { %648 = dma.done.wait [#allocation5], 16 }
   0xd   :  { %649 = vsyncadd [#allocation5], 4294967280 }
   0xe   :  { %17 = sfence }
   0xf   :  { %18 = vsyncpa [#allocation8], 0  ;;  %s711_s29 = smov 0  }
  0x10 LB: > { %s717_s0 = sadd.s32 4294967295, %s658_s29   ;;  %p513_p5 = scmp.ge.s32.totalorder %s658_s29, 1  ;;  %s658_s29 = sphi %s711_s29, %s24_s29  }
  0x11   : > { %p181_p6 = scmp.lt.s32.totalorder %s658_s29, 9 }
  0x13   : > { %p182_p7 = pnand %p513_p5, %p181_p6 }
  0x14   : > { %p514_p8 = scmp.ne.s32.totalorder (!%p182_p7), %s717_s0, 0 }
  0x15   : > { %185 = sbr.rel (%p182_p7) target bundleno = 774 (0x306), region = 40 }
  0x1c   : > { %202 = sbr.rel (%p514_p8) target bundleno = 35 (0x23), region = 44  ;;  %v203_v0 = vld [vmem:[%s792_s6] sm:$0x1] (!%p514_p8)  ;;  %vm204_vm0 = vcmask (!%p514_p8), 253952  }
  0x1d   : > { %205 = vst.msk [vmem:[#allocation4] sm:$0x1] (!%p514_p8), %vm204_vm0, %v203_v0 }
  0x23 PF: > { %s206_s9 = sld [smem:[#allocation6 + %s717_s0]] }
  0x29   : > { %p207_p9 = scmp.gt.s32.totalorder %s206_s9, 0  ;;  %p515_p10 = scmp.lt.s32.totalorder %s206_s9, 63 }
  0x2b   : > { %s795_s9 = smov (!%p207_p9, %s206_s9), 0 }
  0x2c   : > { %s797_s9 = smov (!%p515_p10, %s795_s9), 63 }
  0x2d   : > { %s211_s12 = scalar_lea.vmem %s787_s1, %s797_s9 }
  0x2e   : > { %v229_v1 = vld [vmem:[%s211_s12] sm:$0x1] }
  0x2f   : > { %230 = vst [vmem:[#allocation2] sm:$0x1] %v229_v1 }
  0x30   : > { %255 = vsyncadd [#allocation3], 16 }
  0x31   : > { %650 = dma.done.wait [#allocation3], 16 }
  0x32   : > { %651 = vsyncadd [#allocation3], 4294967280  ;;  %v661_v2 = vmov 0.0|0.0   ;;  %vm662_vm1 = vmmov 0   ;;  %v663_v3 = vmov 0.0   ;;  %v261_v4 = vld [vmem:[%s788_s2] sm:$0xff]  ;;  %v442_v35 = vlaneseq }
  0x33   : > { %566 = vmatprep.subr.bf16.mxu0 %v661_v2  ;;  %572 = vmatprep.subr.bf16.mxu1 %v661_v2  ;;  %v262_v5 = vld [vmem:[%s788_s2 + $0x8] sm:$0xff]  ;;  %v340_v6 = vld [vmem:[%s789_s3] sm:$0xff]  ;;  %v263_v9 = vld [vmem:[%s788_s2 + $0x10] sm:$0xff]  ;;  %vm266_vm2 = vcmask 261120   ;;  %s664_s9 = smov 64   ;;  %s665_s12 = smov 96  }
  0x34   : > { %552 = vmatprep.mubr.msk.f32.mxu0 %vm662_vm1, %v663_v3  ;;  %563 = vmatprep.mubr.msk.f32.mxu1 %vm662_vm1, %v663_v3  ;;  %v567_v7 = vpack.c.bf16 %v262_v5, %v261_v4  ;;  %v341_v8 = vld [vmem:[%s789_s3 + $0x8] sm:$0xff]  ;;  %v264_v10 = vld [vmem:[%s788_s2 + $0x18] sm:$0xff]  ;;  %v342_v12 = vld [vmem:[%s789_s3 + $0x10] sm:$0xff]  ;;  %v443_v36 = vshrl.u32 %v442_v35, 7  ;;  %s666_s13 = smov 32   ;;  %s667_s14 = smov [#allocation7]  }
  0x35   : > { %v573_v11 = vpack.c.bf16 %v341_v8, %v340_v6  ;;  %v343_v13 = vld [vmem:[%s789_s3 + $0x18] sm:$0xff]  ;;  %v570_v14 = vpack.c.bf16 %v264_v10, %v263_v9  ;;  %v260_v17 = vld [vmem:[#allocation4] sm:$0x1]  ;;  %v344_v18 = vld [vmem:[%s791_s5] sm:$0x1]  ;;  %s466_s15 = sshll.u32 %s667_s14, 4  ;;  %s467_s15 = int_to_ptr.vmem [resolvable:$true] %s466_s15 }
  0x36   : > { %568 = vmatpush3.bf16.msra.mxu0 %v567_v7  ;;  %v576_v15 = vpack.c.bf16 %v343_v13, %v342_v12  ;;  %v259_v16 = vld [vmem:[#allocation2] sm:$0x1]  ;;  %v444_v37 = vsub.s32 0, %v443_v36  ;;  %vm455_vm3 = vcmask 253952   ;;  %p582_p11 = scmp.eq.s32.totalorder %s717_s0, 7  ;;  %s531_s16 = scalar_lea.vmem [#allocation7], %s658_s29 }
  0x37   : > { %574 = vmatpush3.bf16.msra.mxu1 %v573_v11  ;;  %569 = vmatprep.subr.bf16.mxu0 %v661_v2  ;;  %v265_v24 = vld [vmem:[%s790_s4] sm:$0x1]  ;;  %s618_s17 = scalar_lea.vmem %s467_s15, 128  ;;  %p625_p1 = scmp.lt.s32.totalorder %s467_s15, %s467_s15 }
  0x38   : > { %575 = vmatprep.subr.bf16.mxu1 %v661_v2  ;;  %v445_v39 = vrot.slane %v260_v17, %v444_v37  ;;  %p619_p12 = scmp.ne.s32.totalorder %s467_s15, %s618_s17  ;;  %p626_p2 = scmp.lt.s32.totalorder %s618_s17, %s618_s17 }
  0x3a   : > { %571 = vmatpush3.bf16.msra.mxu0 %v570_v14  ;;  %p620_p13 = pnand %p619_p12, %p582_p11  ;;  %p627_p3 = por %p626_p2, %p625_p1 }
  0x3b   : > { %577 = vmatpush3.bf16.msra.mxu1 %v576_v15 }
  0x3c   : > { %p621_p0 = pneg %p620_p13 }
  0x3d   : > { %553 = vmatmul.mubr.msk.f32.vlgmr.msra.gmra.mrb[0].mxu0 %vm266_vm2, %v259_v16 }
  0x3e   : > { %564 = vmatmul.mubr.msk.f32.vlgmr.msra.gmra.mrb[0].mxu1 %vm266_vm2, %v260_v17  ;;  %p628_p4 = pnand %p627_p3, %p621_p0 }
 0x110   : > { %v336_v19 = vpop.f32.mrb[0].mxu0 }
 0x111   : > { %v414_v20 = vpop.f32.mrb[0].mxu1  ;;  %v554_v21 = vpop.f32.mrb[1].mxu0  ;;  %v337_v25 = vadd.f32 %v336_v19, %v265_v24 }
 0x112   : > { %v415_v22 = vadd.f32 %v414_v20, %v344_v18  ;;  %v565_v23 = vpop.f32.mrb[1].mxu1 }
 0x114   : > { %426 = vrot.lane.b32.xlu0 %v415_v22, %s664_s9  ;;  %v418_v26 = vadd.f32 %v415_v22, %v337_v25 }
 0x116   : > { %v522_v27 = vmul.f32 -1.442695, %v418_v26 }
 0x118   : > { %600 = vpow2.f32 %v522_v27 }
 0x122   : > { %v601_v28 = vpop.eup %600 }
 0x123   : > { %v422_v29 = vadd.f32 1.0, %v601_v28 }
 0x125   : > { %602 = vrcp.f32 %v422_v29 }
 0x12f   : > { %v603_v30 = vpop.eup %602 }
 0x130   : > { %v436_v41 = vsub.f32 1.0, %v603_v30 }
 0x186   : > { %v427_v31 = vpop.permute.xlu0 %426 }
 0x187   : > { %v429_v32 = vmul.f32 %v603_v30, %v427_v31 }
 0x189   : > { %431 = vrot.lane.b32.xlu0 %v429_v32, %s664_s9 }
 0x1fb   : > { %v432_v33 = vpop.permute.xlu0 %431 }
 0x1fc   : > { %v434_v34 = vadd.f32 %v432_v33, %v337_v25 }
 0x1fe   : > { %604 = vtanh.f32 %v434_v34 }
 0x208   : > { %v605_v38 = vpop.eup %604 }
 0x209   : > { %438 = vrot.lane.b32.xlu1 %v605_v38, %s665_s12 }
 0x20d   : > { %446 = vrot.lane.b32.xlu1 %v445_v39, %s666_s13 }
 0x27b   : > { %v439_v40 = vpop.permute.xlu1 %438 }
 0x27c   : > { %v441_v43 = vmul.f32 %v439_v40, %v436_v41 }
 0x27f   : > { %v447_v42 = vpop.permute.xlu1 %446 }
 0x280   : > { %v449_v44 = vmul.f32 %v603_v30, %v447_v42 }
 0x282   : > { %v450_v45 = vadd.f32 %v449_v44, %v441_v43 }
 0x284   : > { %452 = vrot.lane.b32.xlu0 %v450_v45, %s665_s12 }
 0x2f6   : > { %v453_v46 = vpop.permute.xlu0 %452 }
 0x2f7   : > { %456 = vst.msk [vmem:[#allocation4] sm:$0x1] %vm455_vm3, %v453_v46  ;;  %533 = vst.msk [vmem:[%s531_s16 - $0x1] sm:$0x1] %vm455_vm3, %v453_v46 }
 0x2f8   : > { %631 = shalt.err (!%p628_p4)
}
 0x2f9   : > { %s632_s20 = scalar_lea.hbm %s793_s7, 128 }
 0x2fa   : > { %p633_p5 = scmp.ne.s32.totalorder %s793_s7, %s632_s20  ;;  %p638_p8 = scmp.lt.u32.totalorder %s632_s20, %s793_s7 }
 0x2fc   : > { %p634_p6 = pnand %p633_p5, %p582_p11 }
 0x2fe   : > { %p635_p7 = pneg %p634_p6 }
 0x300   : > { %p640_p9 = pnand %p638_p8, %p635_p7 }
 0x302   : > { %643 = shalt.err (!%p640_p9)
}
 0x303   : > { %579 = dma.vmem_to_hbm [thread:$0]  (%p582_p11), %s467_s15, 128, %s793_s7, [#allocation8]  }
 0x304   : > { %653 = dma.done.wait (%p582_p11), [#allocation8], 128  }
 0x305   : > { %655 = vsyncadd (%p582_p11), [#allocation8], 4294967168 }
 0x306 PF: > { %s24_s29 = sadd.s32 1, %s658_s29  }
 0x307   : > { %p21_p10 = scmp.ge.s32.totalorder %s24_s29, 10  }
 0x309   :  { %23 = sbr.rel (!%p21_p10) target bundleno = 16 (0x10), region = 110 }
 0x310   :  { %479 = vsyncpa [#allocation8], 1 }
 0x311   :  { %481 = vsyncpa [#allocation8 + $0x1], 1 }
 0x312   :  { %482 = vsyncmov [#allocation3] }
 0x315   :  { %s483_s27 = vpop.sfrf %482 }
 0x316   :  { %p528_p12 = scmp.ne.s32.totalorder %s483_s27, 0 }
 0x318   :  { %487 = shalt.err (%p528_p12)  }

</bundles_post_ra>
